<compile_context>
chip_gen: v6e
topology: v6e:2x2x1
jax: 0.10.0
libtpu: 0.0.40
codegen_flags: <defaults>
</compile_context>

<pallas_src>
import functools

import numpy as np

import jax
import jax.numpy as jnp
from jax.experimental import pallas as pl
from jax.experimental.pallas import tpu as pltpu


# ---------------------------------------------------------------------------
# Small helpers
# ---------------------------------------------------------------------------

def _round_up(n: int, m: int) -> int:
    return ((n + m - 1) // m) * m


def _cdiv(a: int, b: int) -> int:
    return -(-a // b)


def _pad_to(x, shape):
    pads = [(0, s - d) for d, s in zip(x.shape, shape)]
    if any(p[1] for p in pads):
        return jnp.pad(x, pads)
    return x


def _device_kind() -> str:
    try:
        return jax.devices()[0].device_kind.lower()
    except Exception:
        return ""


def _mxu_lane_align() -> int:
    # v6e / v7x have 2x 256x256 MXUs; 256-wide K/N tiles fill them better once the
    # dim actually exceeds 128. v5e (128x128 MXUs) stays 128-aligned.
    kind = _device_kind()
    return 256 if any(t in kind for t in ("v6", "v7", "7x")) else 128


def _detect_multi_core() -> bool:
    # v7x has 2 TensorCores per chip; guarantee >=2 batch tiles there.
    kind = _device_kind()
    return any(t in kind for t in ("v7", "7x"))


_MULTI_CORE = _detect_multi_core()


def _physical_vmem_bytes() -> int:
    try:
        info = pltpu.get_tpu_info()
        v = getattr(info, "vmem_capacity_bytes", None)
        if v:
            return int(v)
    except Exception:
        pass
    return 64 << 20  # conservative (v7x per-core VMEM)


def _round_feature(d: int, align: int) -> int:
    # Never over-pad tiny dims to 256; lane-density only needs 128.
    return _round_up(d, 128) if d <= 128 else _round_up(d, align)


def _choose_batch_tiling(B: int, multi_core: bool, max_tile: int = 512):
    """Pick (TB, Bp): tile rows and padded batch. Minimal padding (multiple of 8),
    tiles capped at max_tile, and >=2 tiles on multi-core chips when B >= 16."""
    Bp8 = _round_up(B, 8)
    min_tiles = 2 if (multi_core and B >= 16) else 1
    n_tiles = max(min_tiles, _cdiv(Bp8, max_tile))
    TB = _round_up(_cdiv(Bp8, n_tiles), 8)
    Bp = TB * n_tiles
    return TB, Bp


@functools.lru_cache(maxsize=1)
def _single_buffer_supported() -> bool:
    """Probe whether pipeline_mode=pl.Buffered(1) lowers/runs on this jax/libtpu.
    Falls back to default (double-buffered) resident blocks if not."""
    if not hasattr(pl, "Buffered"):
        return False

    def _probe_kernel(x_ref, o_ref):
        o_ref[...] = x_ref[...]

    try:
        probe = pl.pallas_call(
            _probe_kernel,
            out_shape=jax.ShapeDtypeStruct((8, 128), jnp.float32),
            grid=(1,),
            in_specs=[pl.BlockSpec((8, 128), lambda i: (0, 0),
                                   pipeline_mode=pl.Buffered(1))],
            out_specs=pl.BlockSpec((8, 128), lambda i: (0, 0)),
        )
        jax.block_until_ready(probe(jnp.zeros((8, 128), jnp.float32)))
        return True
    except Exception:
        return False


# ---------------------------------------------------------------------------
# Kernel
# ---------------------------------------------------------------------------

def mlp3_kernel(x_ref, w1_ref, b1_ref, w2_ref, b2_ref, w3_ref, b3_ref, o_ref):
    # x may arrive as f32 (cast here — a VPU op hidden under MXU/DMA slack) or as
    # already-padded bf16; weights are bf16, biases f32, accumulation f32.
    x = x_ref[...].astype(jnp.bfloat16)
    h1 = jnp.dot(x, w1_ref[...], preferred_element_type=jnp.float32) + b1_ref[...]
    h2 = jnp.dot(h1.astype(jnp.bfloat16), w2_ref[...],
                 preferred_element_type=jnp.float32) + b2_ref[...]
    h3 = jnp.dot(h2.astype(jnp.bfloat16), w3_ref[...],
                 preferred_element_type=jnp.float32) + b3_ref[...]
    o_ref[...] = h3.astype(o_ref.dtype)


# ---------------------------------------------------------------------------
# Parameter preparation (done ONCE, cached by the caller)
# ---------------------------------------------------------------------------

def prepare_simple_nn_params(w1, b1, w2, b2, w3, b3, *, lane_align=None):
    """Pad feature dims to lane-dense multiples and cast weights to bf16 once.

    Weights are stored [in, out] (transposed vs. PyTorch's [out, in]), biases [out].
    Returns (params_tuple, output_size). Reuse params_tuple across forward calls so
    the pad/cast HBM pass never happens per call.
    """
    if lane_align is None:
        lane_align = _mxu_lane_align()
    I, H = w1.shape
    O = w3.shape[1]
    Ip = _round_feature(I, lane_align)
    Hp = _round_feature(H, lane_align)
    Op = _round_feature(O, lane_align)

    # Padded input columns hit zero weight rows; padded hidden/output columns get
    # zero weights + zero bias, so the extra lanes carry exact zeros.
    w1p = _pad_to(w1, (Ip, Hp)).astype(jnp.bfloat16)
    w2p = _pad_to(w2, (Hp, Hp)).astype(jnp.bfloat16)
    w3p = _pad_to(w3, (Hp, Op)).astype(jnp.bfloat16)
    b1p = _pad_to(b1.reshape(1, H), (1, Hp))  # biases stay f32
    b2p = _pad_to(b2.reshape(1, H), (1, Hp))
    b3p = _pad_to(b3.reshape(1, O), (1, Op))

    params = (w1p, b1p, w2p, b2p, w3p, b3p)
    params = jax.block_until_ready(jax.device_put(params))
    return params, O


# ---------------------------------------------------------------------------
# Forward
# ---------------------------------------------------------------------------

@functools.partial(
    jax.jit, static_argnames=("out_features", "single_buffer", "out_dtype"))
def _forward_jit(x, w1p, b1p, w2p, b2p, w3p, b3p, *,
                 out_features, single_buffer, out_dtype=jnp.float32):
    B, I = x.shape
    Ip, Hp = w1p.shape
    Op = w3p.shape[1]
    O = out_features

    TB, Bp = _choose_batch_tiling(B, _MULTI_CORE)

    # x path: avoid an extra HBM pass when no padding is needed (cast in-kernel);
    # otherwise pad+cast in a single fused XLA pass producing bf16.
    if B == Bp and I == Ip:
        x_p = x
    else:
        x_p = _pad_to(x, (Bp, Ip)).astype(jnp.bfloat16)

    # VMEM plan: resident weights (single- or double-buffered) + double-buffered
    # x/out tiles + f32 intermediates. Set the scoped limit explicitly (v5e default
    # is only ~16 MiB; v7x physical is 64 MiB).
    # NOTE: once H grows toward 2-4K, switch to tiling Hp/Op on an extra grid axis
    # (K axis marked "arbitrary" with an f32 VMEM accumulator) instead of keeping all
    # three weights resident — required to fit v7x's 64 MiB.
    out_itemsize = np.dtype(out_dtype).itemsize
    weight_bufs = 1 if single_buffer else 2
    vmem_budget = (
        weight_bufs * ((Ip * Hp + Hp * Hp + Hp * Op) * 2 + (2 * Hp + Op) * 4)
        + 2 * TB * Ip * x_p.dtype.itemsize
        + 2 * TB * Op * out_itemsize
        + 2 * TB * Hp * 4
    )
    vmem_limit = int(min(max(32 << 20, 2 * vmem_budget),
                         max(32 << 20, _physical_vmem_bytes() - (16 << 20))))

    flops = 2 * Bp * (Ip * Hp + Hp * Hp + Hp * Op)
    bytes_accessed = (x_p.size * x_p.dtype.itemsize
                      + (Ip * Hp + Hp * Hp + Hp * Op) * 2
                      + (2 * Hp + Op) * 4
                      + Bp * Op * out_itemsize)
    cost = pl.CostEstimate(flops=flops, transcendentals=0,
                           bytes_accessed=bytes_accessed)

    if single_buffer:
        # Constant index_map -> DMA'd once; Buffered(1) also halves the VMEM held.
        resident = lambda shape: pl.BlockSpec(shape, lambda i: (0, 0),
                                              pipeline_mode=pl.Buffered(1))
    else:
        resident = lambda shape: pl.BlockSpec(shape, lambda i: (0, 0))

    out_p = pl.pallas_call(
        mlp3_kernel,
        out_shape=jax.ShapeDtypeStruct((Bp, Op), out_dtype),
        grid=(Bp // TB,),
        in_specs=[
            pl.BlockSpec((TB, Ip), lambda i: (i, 0)),   # x: tiled over batch
            resident((Ip, Hp)),                          # w1 (VMEM-resident)
            resident((1, Hp)),                           # b1
            resident((Hp, Hp)),                          # w2
            resident((1, Hp)),                           # b2
            resident((Hp, Op)),                          # w3
            resident((1, Op)),                           # b3
        ],
        out_specs=pl.BlockSpec((TB, Op), lambda i: (i, 0)),
        compiler_params=pltpu.CompilerParams(
            dimension_semantics=("parallel",),           # batch axis -> both TCs on v7x
            vmem_limit_bytes=vmem_limit,
        ),
        cost_estimate=cost,
    )(x_p, w1p, b1p, w2p, b2p, w3p, b3p)

    # Slice only when padding was actually applied (skip the extra pass otherwise).
    if Bp != B and Op != O:
        return out_p[:B, :O]
    if Bp != B:
        return out_p[:B]
    if Op != O:
        return out_p[:, :O]
    return out_p


def simple_nn_forward(x, params, output_size, out_dtype=jnp.float32):
    """x: [B, input_size] f32; params from prepare_simple_nn_params(). -> [B, output_size]."""
    return _forward_jit(x, *params,
                        out_features=int(output_size),
                        single_buffer=_single_buffer_supported(),
                        out_dtype=out_dtype)


def init_linear_params(key, in_features, out_features):
    """Deterministic init mimicking nn.Linear (uniform(-1/sqrt(in), 1/sqrt(in)))."""
    kw, kb = jax.random.split(key)
    bound = 1.0 / jnp.sqrt(jnp.float32(in_features))
    # Stored as [in, out] (already transposed relative to PyTorch's [out, in]).
    w = jax.random.uniform(kw, (in_features, out_features), jnp.float32, -bound, bound)
    b = jax.random.uniform(kb, (out_features,), jnp.float32, -bound, bound)
    return w, b


if __name__ == "__main__":
    batch = 8
    input_size = 32
    hidden_size = 64
    output_size = 16

    key = jax.random.PRNGKey(0)
    kx, k1, k2, k3 = jax.random.split(key, 4)

    x = jax.random.normal(kx, (batch, input_size), jnp.float32)
    w1, b1 = init_linear_params(k1, input_size, hidden_size)
    w2, b2 = init_linear_params(k2, hidden_size, hidden_size)
    w3, b3 = init_linear_params(k3, hidden_size, output_size)

    # Pad/cast weights ONCE; reuse across calls (inference-style).
    params, out_features = prepare_simple_nn_params(w1, b1, w2, b2, w3, b3)

    out = simple_nn_forward(x, params, out_features)
    jax.block_until_ready(out)
    assert out.shape == (batch, output_size)

    # Reference mimicking the kernel's bf16 MXU inputs / f32 accumulation.
    def bf(a):
        return a.astype(jnp.bfloat16).astype(jnp.float32)

    h1 = bf(x) @ bf(w1) + b1
    h2 = bf(h1) @ bf(w2) + b2
    ref = bf(h2) @ bf(w3) + b3
    assert jnp.allclose(out, ref, atol=2e-2, rtol=2e-2)

    # Loose sanity check against the pure-f32 PyTorch-equivalent forward.
    ref_f32 = ((x @ w1 + b1) @ w2 + b2) @ w3 + b3
    assert jnp.allclose(out, ref_f32, atol=0.1, rtol=0.1)

    print("KERNEL_OK")
</pallas_src>

<mosaic_0001>
module attributes {stable_mosaic.version = 11 : i64} {
  func.func @_probe_kernel(%arg0: i32, %arg1: memref<8x128xf32, #tpu.memory_space<vmem>>, %arg2: memref<8x128xf32, #tpu.memory_space<vmem>>) attributes {dimension_semantics = [#tpu.dimension_semantics<arbitrary>], iteration_bounds = array<i64: 1>, scalar_prefetch = 0 : i64, scratch_operands = 0 : i64, tpu.core_type = #tpu.core_type<tc>, window_params = [{pipeline_mode = #tpu.pipeline_mode<synchronous>, transform_indices = @transform_0, window_bounds = array<i64: 8, 128>}, {pipeline_mode = #tpu.pipeline_mode<synchronous>, transform_indices = @transform_1, window_bounds = array<i64: 8, 128>}]} {
    %c0 = arith.constant 0 : index
    %c0_0 = arith.constant 0 : index
    %0 = vector.load %arg1[%c0, %c0_0] : memref<8x128xf32, #tpu.memory_space<vmem>>, vector<8x128xf32>
    %c0_1 = arith.constant 0 : index
    %c0_2 = arith.constant 0 : index
    %1 = vector.load %arg2[%c0_1, %c0_2] : memref<8x128xf32, #tpu.memory_space<vmem>>, vector<8x128xf32>
    tpu.vector_store %arg2[%c0_1, %c0_2], %0 {strides = array<i32>} : memref<8x128xf32, #tpu.memory_space<vmem>>, vector<8x128xf32>,
    return
  }
  func.func @transform_0(%arg0: i32) -> (i32, i32) {
    %c0_i32 = arith.constant 0 : i32
    %c0_i32_0 = arith.constant 0 : i32
    %c0_i32_1 = arith.constant 0 : i32
    return %c0_i32, %c0_i32_0 : i32, i32
  }
  func.func @transform_1(%arg0: i32) -> (i32, i32) {
    %c0_i32 = arith.constant 0 : i32
    %c0_i32_0 = arith.constant 0 : i32
    %c0_i32_1 = arith.constant 0 : i32
    return %c0_i32, %c0_i32_0 : i32, i32
  }
}

module attributes {stable_mosaic.version = 11 : i64} {
  func.func @mlp3_kernel(%arg0: i32, %arg1: memref<8x128xbf16, #tpu.memory_space<vmem>>, %arg2: memref<128x128xbf16, #tpu.memory_space<vmem>>, %arg3: memref<1x128xf32, #tpu.memory_space<vmem>>, %arg4: memref<128x128xbf16, #tpu.memory_space<vmem>>, %arg5: memref<1x128xf32, #tpu.memory_space<vmem>>, %arg6: memref<128x128xbf16, #tpu.memory_space<vmem>>, %arg7: memref<1x128xf32, #tpu.memory_space<vmem>>, %arg8: memref<8x128xf32, #tpu.memory_space<vmem>>) attributes {dimension_semantics = [#tpu.dimension_semantics<parallel>], iteration_bounds = array<i64: 1>, scalar_prefetch = 0 : i64, scratch_operands = 0 : i64, tpu.core_type = #tpu.core_type<tc>, window_params = [{transform_indices = @transform_0, window_bounds = array<i64: 8, 128>}, {pipeline_mode = #tpu.pipeline_mode<synchronous>, transform_indices = @transform_1, window_bounds = array<i64: 128, 128>}, {pipeline_mode = #tpu.pipeline_mode<synchronous>, transform_indices = @transform_2, window_bounds = array<i64: 1, 128>}, {pipeline_mode = #tpu.pipeline_mode<synchronous>, transform_indices = @transform_3, window_bounds = array<i64: 128, 128>}, {pipeline_mode = #tpu.pipeline_mode<synchronous>, transform_indices = @transform_4, window_bounds = array<i64: 1, 128>}, {pipeline_mode = #tpu.pipeline_mode<synchronous>, transform_indices = @transform_5, window_bounds = array<i64: 128, 128>}, {pipeline_mode = #tpu.pipeline_mode<synchronous>, transform_indices = @transform_6, window_bounds = array<i64: 1, 128>}, {transform_indices = @transform_7, window_bounds = array<i64: 8, 128>}]} {
    %c0 = arith.constant 0 : index
    %c0_0 = arith.constant 0 : index
    %0 = vector.load %arg1[%c0, %c0_0] : memref<8x128xbf16, #tpu.memory_space<vmem>>, vector<8x128xbf16>
    %c0_1 = arith.constant 0 : index
    %c0_2 = arith.constant 0 : index
    %1 = vector.load %arg2[%c0_1, %c0_2] : memref<128x128xbf16, #tpu.memory_space<vmem>>, vector<128x128xbf16>
    %cst = arith.constant dense<0.000000e+00> : vector<8x128xf32>
    %2 = tpu.matmul %0, %1, %cst {dimension_numbers = #tpu.dot_dimension_numbers<[1], [0], [0], [1], [0, 0, 1, 1], [], []>} : vector<8x128xbf16>, vector<128x128xbf16>, vector<8x128xf32> -> vector<8x128xf32>
    %c0_3 = arith.constant 0 : index
    %c0_4 = arith.constant 0 : index
    %3 = vector.load %arg3[%c0_3, %c0_4] : memref<1x128xf32, #tpu.memory_space<vmem>>, vector<1x128xf32>
    %4 = vector.broadcast %3 : vector<1x128xf32> to vector<8x128xf32>
    %5 = arith.addf %2, %4 : vector<8x128xf32>
    %6 = arith.truncf %5 : vector<8x128xf32> to vector<8x128xbf16>
    %c0_5 = arith.constant 0 : index
    %c0_6 = arith.constant 0 : index
    %7 = vector.load %arg4[%c0_5, %c0_6] : memref<128x128xbf16, #tpu.memory_space<vmem>>, vector<128x128xbf16>
    %cst_7 = arith.constant dense<0.000000e+00> : vector<8x128xf32>
    %8 = tpu.matmul %6, %7, %cst_7 {dimension_numbers = #tpu.dot_dimension_numbers<[1], [0], [0], [1], [0, 0, 1, 1], [], []>} : vector<8x128xbf16>, vector<128x128xbf16>, vector<8x128xf32> -> vector<8x128xf32>
    %c0_8 = arith.constant 0 : index
    %c0_9 = arith.constant 0 : index
    %9 = vector.load %arg5[%c0_8, %c0_9] : memref<1x128xf32, #tpu.memory_space<vmem>>, vector<1x128xf32>
    %10 = vector.broadcast %9 : vector<1x128xf32> to vector<8x128xf32>
    %11 = arith.addf %8, %10 : vector<8x128xf32>
    %12 = arith.truncf %11 : vector<8x128xf32> to vector<8x128xbf16>
    %c0_10 = arith.constant 0 : index
    %c0_11 = arith.constant 0 : index
    %13 = vector.load %arg6[%c0_10, %c0_11] : memref<128x128xbf16, #tpu.memory_space<vmem>>, vector<128x128xbf16>
    %cst_12 = arith.constant dense<0.000000e+00> : vector<8x128xf32>
    %14 = tpu.matmul %12, %13, %cst_12 {dimension_numbers = #tpu.dot_dimension_numbers<[1], [0], [0], [1], [0, 0, 1, 1], [], []>} : vector<8x128xbf16>, vector<128x128xbf16>, vector<8x128xf32> -> vector<8x128xf32>
    %c0_13 = arith.constant 0 : index
    %c0_14 = arith.constant 0 : index
    %15 = vector.load %arg7[%c0_13, %c0_14] : memref<1x128xf32, #tpu.memory_space<vmem>>, vector<1x128xf32>
    %16 = vector.broadcast %15 : vector<1x128xf32> to vector<8x128xf32>
    %17 = arith.addf %14, %16 : vector<8x128xf32>
    %c0_15 = arith.constant 0 : index
    %c0_16 = arith.constant 0 : index
    %18 = vector.load %arg8[%c0_15, %c0_16] : memref<8x128xf32, #tpu.memory_space<vmem>>, vector<8x128xf32>
    tpu.vector_store %arg8[%c0_15, %c0_16], %17 {strides = array<i32>} : memref<8x128xf32, #tpu.memory_space<vmem>>, vector<8x128xf32>,
    return
  }
  func.func @transform_0(%arg0: i32) -> (i32, i32) {
    %c0_i32 = arith.constant 0 : i32
    %c0_i32_0 = arith.constant 0 : i32
    return %arg0, %c0_i32 : i32, i32
  }
  func.func @transform_1(%arg0: i32) -> (i32, i32) {
    %c0_i32 = arith.constant 0 : i32
    %c0_i32_0 = arith.constant 0 : i32
    %c0_i32_1 = arith.constant 0 : i32
    return %c0_i32, %c0_i32_0 : i32, i32
  }
  func.func @transform_2(%arg0: i32) -> (i32, i32) {
    %c0_i32 = arith.constant 0 : i32
    %c0_i32_0 = arith.constant 0 : i32
    %c0_i32_1 = arith.constant 0 : i32
    return %c0_i32, %c0_i32_0 : i32, i32
  }
  func.func @transform_3(%arg0: i32) -> (i32, i32) {
    %c0_i32 = arith.constant 0 : i32
    %c0_i32_0 = arith.constant 0 : i32
    %c0_i32_1 = arith.constant 0 : i32
    return %c0_i32, %c0_i32_0 : i32, i32
  }
  func.func @transform_4(%arg0: i32) -> (i32, i32) {
    %c0_i32 = arith.constant 0 : i32
    %c0_i32_0 = arith.constant 0 : i32
    %c0_i32_1 = arith.constant 0 : i32
    return %c0_i32, %c0_i32_0 : i32, i32
  }
  func.func @transform_5(%arg0: i32) -> (i32, i32) {
    %c0_i32 = arith.constant 0 : i32
    %c0_i32_0 = arith.constant 0 : i32
    %c0_i32_1 = arith.constant 0 : i32
    return %c0_i32, %c0_i32_0 : i32, i32
  }
  func.func @transform_6(%arg0: i32) -> (i32, i32) {
    %c0_i32 = arith.constant 0 : i32
    %c0_i32_0 = arith.constant 0 : i32
    %c0_i32_1 = arith.constant 0 : i32
    return %c0_i32, %c0_i32_0 : i32, i32
  }
  func.func @transform_7(%arg0: i32) -> (i32, i32) {
    %c0_i32 = arith.constant 0 : i32
    %c0_i32_0 = arith.constant 0 : i32
    return %arg0, %c0_i32 : i32, i32
  }
}

</mosaic_0001>

<bundles_post_ra>
// kernel: tpu_custom_call.1
= control target key start
LH: loop header
LB: loop body
LE: loop exit
PB: predicated region body
PF: predicated region fallthrough
CT: control target
= control target key end

     0   :  { %6 = vsyncpa [#allocation3], 0  ;;  %s102_s0 = inlined_call_operand.hbm [shape: f32[8,128], index: 0, kind: input, shape index: {}]   ;;  %s103_s1 = inlined_call_operand.hbm [shape: f32[8,128], index: 1, kind: output, shape index: {}]  }
   0x1   :  { %7 = vsyncpa [#allocation4], 0  ;;  %s84_s6 = smov [#allocation2]  }
   0x2   :  { %s14_s7 = sshll.u32 %s84_s6, 4  ;;  %s15_s7 = int_to_ptr.vmem [resolvable:$true] %s14_s7 }
   0x3   :  { %s48_s8 = scalar_lea.vmem %s15_s7, 128  ;;  %p53_p1 = scmp.lt.s32.totalorder %s15_s7, %s15_s7 }
   0x4   :  { %p49_p0 = scmp.ne.s32.totalorder %s15_s7, %s48_s8  ;;  %p54_p2 = scmp.lt.s32.totalorder %s48_s8, %s48_s8 }
   0x6   :  { %p55_p3 = por %p54_p2, %p53_p1 }
   0x8   :  { %p56_p4 = pnand %p55_p3, %p49_p0 }
   0xa   :  { %59 = shalt.err (!%p56_p4)
}
   0xb   :  { %17 = dma.hbm_to_vmem [thread:$0]  %s102_s0, 128, %s15_s7, [#allocation3]  }
   0xc   :  { %80 = dma.done.wait [#allocation3], 128  }
   0xd   :  { %81 = vsyncadd [#allocation3], 4294967168  ;;  %s85_s11 = smov [#allocation5]   ;;  %v21_v0 = vld [vmem:[#allocation2] sm:$0xff] }
   0xe   :  { %s29_s12 = sshll.u32 %s85_s11, 4  ;;  %22 = vst [vmem:[#allocation5] sm:$0xff] %v21_v0  ;;  %s30_s12 = int_to_ptr.vmem [resolvable:$true] %s29_s12 }
   0xf   :  { %s60_s13 = scalar_lea.vmem %s30_s12, 128  ;;  %p65_p6 = scmp.lt.s32.totalorder %s30_s12, %s30_s12 }
  0x10   :  { %p61_p5 = scmp.ne.s32.totalorder %s30_s12, %s60_s13  ;;  %p66_p7 = scmp.lt.s32.totalorder %s60_s13, %s60_s13 }
  0x12   :  { %p67_p8 = por %p66_p7, %p65_p6 }
  0x14   :  { %p68_p9 = pnand %p67_p8, %p61_p5 }
  0x16   :  { %71 = shalt.err (!%p68_p9)
}
  0x17   :  { %32 = dma.vmem_to_hbm [thread:$0]  %s30_s12, 128, %s103_s1, [#allocation4]  }
  0x18   :  { %82 = dma.done.wait [#allocation4], 128  }
  0x19   :  { %83 = vsyncadd [#allocation4], 4294967168 }
  0x1a   :  { %36 = vsyncpa [#allocation3], 1 }
  0x1b   :  { %37 = vsyncpa [#allocation4], 1 }

// kernel: _forward_jit.1
= control target key start
LH: loop header
LB: loop body
LE: loop exit
PB: predicated region body
PF: predicated region fallthrough
CT: control target
= control target key end

     0   :  { %12 = vsyncpa [#allocation3], 0  ;;  %s756_s0 = inlined_call_operand.vmem [shape: bf16[8,128], index: 0, kind: input, shape index: {}]   ;;  %s757_s1 = inlined_call_operand.hbm [shape: bf16[128,128], index: 1, kind: input, shape index: {}]   ;;  %s758_s2 = inlined_call_operand.vmem [shape: f32[1,128], index: 2, kind: input, shape index: {}]   ;;  %s759_s3 = inlined_call_operand.hbm [shape: bf16[128,128], index: 3, kind: input, shape index: {}]   ;;  %s760_s4 = inlined_call_operand.vmem [shape: f32[1,128], index: 4, kind: input, shape index: {}]   ;;  %s761_s5 = inlined_call_operand.hbm [shape: bf16[128,128], index: 5, kind: input, shape index: {}]   ;;  %s762_s6 = inlined_call_operand.vmem [shape: f32[1,128], index: 6, kind: input, shape index: {}]   ;;  %s763_s7 = inlined_call_operand.hbm [shape: f32[8,128], index: 7, kind: output, shape index: {}]  }
   0x1   :  { %13 = vsyncpa [#allocation6], 0 }
   0x2   :  { %14 = vsyncpa [#allocation4], 0  ;;  %s654_s24 = smov [#allocation5]   ;;  %s655_s26 = smov [#allocation2]  }
   0x3   :  { %s36_s25 = sshll.u32 %s654_s24, 4  ;;  %s22_s27 = sshll.u32 %s655_s26, 4  ;;  %s37_s25 = int_to_ptr.vmem [resolvable:$true] %s36_s25  ;;  %s23_s27 = int_to_ptr.vmem [resolvable:$true] %s22_s27 }
   0x4   :  { %s576_s28 = scalar_lea.vmem %s37_s25, 1024  ;;  %p581_p1 = scmp.lt.s32.totalorder %s37_s25, %s37_s25 }
   0x5   :  { %p577_p0 = scmp.ne.s32.totalorder %s37_s25, %s576_s28  ;;  %p582_p2 = scmp.lt.s32.totalorder %s576_s28, %s576_s28 }
   0x7   :  { %p583_p3 = por %p582_p2, %p581_p1 }
   0x9   :  { %p584_p4 = pnand %p583_p3, %p577_p0 }
   0xb   :  { %587 = shalt.err (!%p584_p4)
}
   0xc   :  { %s656_s29 = smov 64   ;;  %s657_s30 = smov 4  }
   0xd   :  { %42 = dma.hbm_to_vmem [thread:$0]  %s759_s3, 1024, %s37_s25, [#allocation6], %s656_s29, %s656_s29, %s657_s30  }
   0xe   :  { %s596_s10 = scalar_lea.vmem %s23_s27, 1024  ;;  %p601_p6 = scmp.lt.s32.totalorder %s23_s27, %s23_s27 }
   0xf   :  { %p597_p5 = scmp.ne.s32.totalorder %s23_s27, %s596_s10  ;;  %p602_p7 = scmp.lt.s32.totalorder %s596_s10, %s596_s10 }
  0x11   :  { %p603_p8 = por %p602_p7, %p601_p6 }
  0x13   :  { %p604_p9 = pnand %p603_p8, %p597_p5 }
  0x15   :  { %607 = shalt.err (!%p604_p9)
}
  0x16   :  { %28 = dma.hbm_to_vmem [thread:$0]  %s757_s1, 1024, %s23_s27, [#allocation3], %s656_s29, %s656_s29, %s657_s30  }
  0x17   :  { %s658_s13 = smov [#allocation7]  }
  0x18   :  { %s50_s14 = sshll.u32 %s658_s13, 4  ;;  %s51_s14 = int_to_ptr.vmem [resolvable:$true] %s50_s14 }
  0x19   :  { %s616_s15 = scalar_lea.vmem %s51_s14, 1024  ;;  %p621_p11 = scmp.lt.s32.totalorder %s51_s14, %s51_s14 }
  0x1a   :  { %p617_p10 = scmp.ne.s32.totalorder %s51_s14, %s616_s15  ;;  %p622_p12 = scmp.lt.s32.totalorder %s616_s15, %s616_s15 }
  0x1c   :  { %p623_p13 = por %p622_p12, %p621_p11 }
  0x1e   :  { %p624_p0 = pnand %p623_p13, %p617_p10 }
  0x20   :  { %627 = shalt.err (!%p624_p0)
}
  0x21   :  { %56 = dma.hbm_to_vmem [thread:$0]  %s761_s5, 1024, %s51_s14, [#allocation6], %s656_s29, %s656_s29, %s657_s30  }
  0x22   :  { %648 = dma.done.wait [#allocation3], 1024  }
  0x23   :  { %649 = vsyncadd [#allocation3], 4294966272 }
  0x24   :  { %650 = dma.done.wait [#allocation6], 2048  }
  0x25   :  { %651 = vsyncadd [#allocation6], 4294965248  ;;  %v659_v0 = vmov 0.0   ;;  %vm660_vm0 = vmmov 0   ;;  %v544_v1 = vld [vmem:[#allocation2 + $0x38] sm:$0xff]   ;;  %v545_v2 = vld [vmem:[#allocation2 + $0x30] sm:$0xff]  }
  0x26   :  { %476 = vmatprep.subr.bf16.mxu0 %v659_v0  ;;  %492 = vmatprep.mubr.msk.bf16.mxu0 %vm660_vm0, %v659_v0  ;;  %v546_v3 = vld [vmem:[#allocation2 + $0x28] sm:$0xff]   ;;  %v552_v4 = vld [vmem:[#allocation5 + $0x38] sm:$0xff]   ;;  %v547_v5 = vld [vmem:[#allocation2 + $0x20] sm:$0xff]   ;;  %s661_s21 = smov [#allocation8]  }
  0x27   :  { %496 = vmatprep.subr.bf16.mxu1 %v659_v0  ;;  %512 = vmatprep.mubr.msk.bf16.mxu1 %vm660_vm0, %v659_v0  ;;  %v553_v6 = vld [vmem:[#allocation5 + $0x30] sm:$0xff]   ;;  %v548_v7 = vld [vmem:[#allocation2 + $0x18] sm:$0xff]   ;;  %v554_v8 = vld [vmem:[#allocation5 + $0x28] sm:$0xff]   ;;  %s412_s22 = sshll.u32 %s661_s21, 4  ;;  %s413_s22 = int_to_ptr.vmem [resolvable:$true] %s412_s22 }
  0x28   :  { %477 = vmatpush3.bf16.msra.mxu0 %v544_v1  ;;  %497 = vmatpush3.bf16.msra.mxu1 %v552_v4  ;;  %v549_v9 = vld [vmem:[#allocation2 + $0x10] sm:$0xff]   ;;  %v555_v10 = vld [vmem:[#allocation5 + $0x20] sm:$0xff]   ;;  %v550_v11 = vld [vmem:[#allocation2 + $0x8] sm:$0xff]   ;;  %p633_p2 = scmp.lt.s32.totalorder %s413_s22, %s413_s22 }
  0x29   :  { %478 = vmatprep.subr.bf16.mxu0 %v659_v0  ;;  %498 = vmatprep.subr.bf16.mxu1 %v659_v0  ;;  %v556_v12 = vld [vmem:[#allocation5 + $0x18] sm:$0xff]   ;;  %v551_v13 = vld [vmem:[#allocation2] sm:$0xff]   ;;  %v557_v14 = vld [vmem:[#allocation5 + $0x10] sm:$0xff]  }
  0x2a   :  { %v69_v15 = vld [vmem:[%s756_s0] sm:$0xf]  ;;  %v558_v16 = vld [vmem:[#allocation5 + $0x8] sm:$0xff]   ;;  %v560_v18 = vld [vmem:[#allocation7 + $0x38] sm:$0xff]  }
  0x2b   :  { %v559_v17 = vld [vmem:[#allocation5] sm:$0xff]   ;;  %v561_v19 = vld [vmem:[#allocation7 + $0x30] sm:$0xff]   ;;  %v562_v20 = vld [vmem:[#allocation7 + $0x28] sm:$0xff]  }
  0x2c   :  { %479 = vmatpush3.bf16.msra.mxu0 %v545_v2  ;;  %499 = vmatpush3.bf16.msra.mxu1 %v553_v6  ;;  %v563_v21 = vld [vmem:[#allocation7 + $0x20] sm:$0xff]   ;;  %v564_v22 = vld [vmem:[#allocation7 + $0x18] sm:$0xff]   ;;  %v565_v23 = vld [vmem:[#allocation7 + $0x10] sm:$0xff]  }
  0x2d   :  { %480 = vmatprep.subr.bf16.mxu0 %v659_v0  ;;  %500 = vmatprep.subr.bf16.mxu1 %v659_v0  ;;  %v566_v24 = vld [vmem:[#allocation7 + $0x8] sm:$0xff]   ;;  %v422_v25 = vld [vmem:[%s758_s2] ss:$0 sm:$0xff] }
  0x2e   :  { %v567_v32 = vld [vmem:[#allocation7] sm:$0xff]  }
  0x2f   :  { %v431_v33 = vld [vmem:[%s760_s4] ss:$0 sm:$0xff]  ;;  %s628_s4 = scalar_lea.vmem %s413_s22, 128 }
  0x30   :  { %481 = vmatpush3.bf16.msra.mxu0 %v546_v3  ;;  %501 = vmatpush3.bf16.msra.mxu1 %v554_v8  ;;  %v440_v40 = vld [vmem:[%s762_s6] ss:$0 sm:$0xff]  ;;  %p629_p1 = scmp.ne.s32.totalorder %s413_s22, %s628_s4  ;;  %p634_p3 = scmp.lt.s32.totalorder %s628_s4, %s628_s4 }
  0x31   :  { %482 = vmatprep.subr.bf16.mxu0 %v659_v0  ;;  %502 = vmatprep.subr.bf16.mxu1 %v659_v0 }
  0x32   :  { %p635_p4 = por %p634_p3, %p633_p2 }
  0x34   :  { %483 = vmatpush3.bf16.msra.mxu0 %v547_v5  ;;  %503 = vmatpush3.bf16.msra.mxu1 %v555_v10  ;;  %p636_p5 = pnand %p635_p4, %p629_p1 }
  0x35   :  { %484 = vmatprep.subr.bf16.mxu0 %v659_v0  ;;  %504 = vmatprep.subr.bf16.mxu1 %v659_v0 }
  0x38   :  { %485 = vmatpush3.bf16.msra.mxu0 %v548_v7  ;;  %505 = vmatpush3.bf16.msra.mxu1 %v556_v12 }
  0x39   :  { %486 = vmatprep.subr.bf16.mxu0 %v659_v0  ;;  %506 = vmatprep.subr.bf16.mxu1 %v659_v0 }
  0x3c   :  { %487 = vmatpush3.bf16.msra.mxu0 %v549_v9  ;;  %507 = vmatpush3.bf16.msra.mxu1 %v557_v14 }
  0x3d   :  { %488 = vmatprep.subr.bf16.mxu0 %v659_v0  ;;  %508 = vmatprep.subr.bf16.mxu1 %v659_v0 }
  0x40   :  { %489 = vmatpush3.bf16.msra.mxu0 %v550_v11  ;;  %509 = vmatpush3.bf16.msra.mxu1 %v558_v16 }
  0x41   :  { %490 = vmatprep.subr.bf16.mxu0 %v659_v0  ;;  %510 = vmatprep.subr.bf16.mxu1 %v659_v0 }
  0x44   :  { %491 = vmatpush3.bf16.msra.mxu0 %v551_v13  ;;  %511 = vmatpush3.bf16.msra.mxu1 %v559_v17 }
  0x45   :  { %516 = vmatprep.subr.bf16.mxu0 %v659_v0 }
  0x47   :  { %493 = vmatmul.mubr.bf16.vlgmr.msra.gmra.mxu0 %v69_v15 }
  0x48   :  { %532 = vmatprep.mubr.msk.bf16.mxu0 %vm660_vm0, %v659_v0  ;;  %517 = vmatpush3.bf16.msra.mxu0 %v560_v18 }
  0x49   :  { %518 = vmatprep.subr.bf16.mxu0 %v659_v0 }
  0x4c   :  { %519 = vmatpush3.bf16.msra.mxu0 %v561_v19 }
  0x4d   :  { %520 = vmatprep.subr.bf16.mxu0 %v659_v0 }
  0x50   :  { %521 = vmatpush3.bf16.msra.mxu0 %v562_v20 }
  0x51   :  { %522 = vmatprep.subr.bf16.mxu0 %v659_v0 }
  0x54   :  { %523 = vmatpush3.bf16.msra.mxu0 %v563_v21 }
  0x55   :  { %524 = vmatprep.subr.bf16.mxu0 %v659_v0 }
  0x58   :  { %525 = vmatpush3.bf16.msra.mxu0 %v564_v22 }
  0x59   :  { %526 = vmatprep.subr.bf16.mxu0 %v659_v0 }
  0x5c   :  { %527 = vmatpush3.bf16.msra.mxu0 %v565_v23 }
  0x5d   :  { %528 = vmatprep.subr.bf16.mxu0 %v659_v0 }
  0x60   :  { %529 = vmatpush3.bf16.msra.mxu0 %v566_v24 }
  0x61   :  { %530 = vmatprep.subr.bf16.mxu0 %v659_v0 }
  0x64   :  { %531 = vmatpush3.bf16.msra.mxu0 %v567_v32 }
 0x107   :  { %v175_v26 = vpop.f32.mrf.mxu0 }
 0x108   :  { %v176_v27 = vadd.f32 %v422_v25, %v175_v26 }
 0x109   :  { %v494_v28 = vpop.f32.mrf.mxu0 }
 0x10a   :  { %v181_v29 = vpack.c.bf16 %v176_v27, %v176_v27 }
 0x10b   :  { %v178_v30 = vpop.f32.mrf.mxu0 }
 0x10c   :  { %513 = vmatmul.mubr.bf16.vlgmr.msra.gmra.mxu1 %v181_v29 }
 0x10d   :  { %v495_v31 = vpop.f32.mrf.mxu0 }
 0x1cc   :  { %v287_v34 = vpop.f32.mrf.mxu1 }
 0x1cd   :  { %v288_v35 = vadd.f32 %v431_v33, %v287_v34 }
 0x1ce   :  { %v514_v36 = vpop.f32.mrf.mxu1 }
 0x1cf   :  { %v293_v37 = vpack.c.bf16 %v288_v35, %v288_v35 }
 0x1d0   :  { %v290_v38 = vpop.f32.mrf.mxu1 }
 0x1d1   :  { %533 = vmatmul.mubr.bf16.vlgmr.msra.gmra.mxu0 %v293_v37 }
 0x1d2   :  { %v515_v39 = vpop.f32.mrf.mxu1 }
 0x291   :  { %v399_v41 = vpop.f32.mrf.mxu0 }
 0x292   :  { %v400_v42 = vadd.f32 %v440_v40, %v399_v41 }
 0x293   :  { %v534_v43 = vpop.f32.mrf.mxu0 }
 0x294   :  { %405 = vst [vmem:[#allocation8] sm:$0xff] %v400_v42 }
 0x295   :  { %v402_v44 = vpop.f32.mrf.mxu0 }
 0x296   :  { %639 = shalt.err (!%p636_p5)
}
 0x297   :  { %415 = dma.vmem_to_hbm [thread:$0]  %s413_s22, 128, %s763_s7, [#allocation4]   ;;  %v535_v45 = vpop.f32.mrf.mxu0 }
 0x298   :  { %652 = dma.done.wait [#allocation4], 128  }
 0x299   :  { %653 = vsyncadd [#allocation4], 4294967168 }
 0x29a   :  { %419 = vsyncpa [#allocation3], 1 }
 0x29b   :  { %420 = vsyncpa [#allocation6], 1 }
 0x29c   :  { %421 = vsyncpa [#allocation4], 1 }

</bundles_post_ra>
